<compile_context>
chip_gen: v5e
topology: v5e:2x2
jax: 0.10.0
libtpu: 0.0.40
codegen_flags: <defaults>
</compile_context>

<pallas_src>
import functools
from typing import NamedTuple, Optional

import jax
import jax.numpy as jnp
from jax.experimental import pallas as pl
from jax.experimental.pallas import tpu as pltpu


_LANES = 128
_MAX_COLS = 4096
# Tensors at or below this size may use a single full-array block in the
# lane-unaligned fallback (4x double-buffered residency stays tiny).
_UNALIGNED_SINGLE_BLOCK_MAX_BYTES = 2 * 1024 * 1024


def _copy_kernel(x_ref, o_ref):
    # Identity copy of the current tile (the materializing `.contiguous()`).
    o_ref[...] = x_ref[...]


class _ChipPlan(NamedTuple):
    block_bytes: int        # target per-block buffer size
    vmem_limit_bytes: int   # explicit scoped-VMEM limit for the pallas_call
    force_two_steps: bool   # v7x: ensure >=2 grid steps for megacore sharding


@functools.lru_cache(maxsize=1)
def _chip_plan() -> _ChipPlan:
    kind = ""
    try:
        kind = jax.devices()[0].device_kind.lower()
    except Exception:  # pragma: no cover - defensive, fall back to defaults
        pass
    if "v6" in kind:
        # v6e: 1 TC, 128 MiB physical VMEM, ~1.4 TB/s HBM -> big blocks.
        return _ChipPlan(6 << 20, 64 << 20, False)
    if "v7" in kind or "tpu7" in kind or "7x" in kind:
        # v7x: 2 TCs share the chip, only 64 MiB physical VMEM per TC.
        return _ChipPlan(4 << 20, 40 << 20, True)
    if "v5" in kind:
        # v5e: scoped-VMEM default is only 16 MiB; raise it explicitly.
        return _ChipPlan(3 << 20, 32 << 20, False)
    # Unknown chip: conservative defaults.
    return _ChipPlan(2 << 20, 32 << 20, False)


def _resolve_size(numel, size):
    """Resolve a single -1 entry in `size`, like torch.Tensor.view."""
    size = list(size)
    if -1 in size:
        neg = size.index(-1)
        known = 1
        for i, s in enumerate(size):
            if i != neg:
                known *= s
        assert known != 0 and numel % known == 0, "view size incompatible with numel"
        size[neg] = numel // known
    total = 1
    for s in size:
        total *= s
    assert total == numel, "view size incompatible with numel"
    return tuple(size)


def _pick_cols(numel) -> Optional[int]:
    """Largest multiple of 128 (<= _MAX_COLS) that divides numel."""
    c = _MAX_COLS
    while c >= _LANES:
        if numel % c == 0:
            return c
        c //= 2
    return None


def _cdiv(a, b):
    return -(-a // b)


def _tiled_copy_slab(slab, plan, itemsize, cost, donate=False):
    """Pipelined HBM->VMEM->HBM copy of a lane-dense (rows, cols) slab."""
    rows, cols = slab.shape
    # Dtype-aware sublane multiple: 8 for 32-bit, 16 for bf16, 32 for int8.
    sublane_mult = 8 * max(1, 4 // itemsize)
    row_bytes = cols * itemsize

    if rows <= sublane_mult:
        # Tiny slab: use the full extent (block == array dim is always legal).
        tile_rows = rows
    else:
        target_rows = max(sublane_mult, plan.block_bytes // row_bytes)
        target_rows = max(sublane_mult,
                          (target_rows // sublane_mult) * sublane_mult)
        max_tile = (rows // sublane_mult) * sublane_mult   # <= rows, >= sublane_mult
        tile_rows = min(target_rows, max_tile)
        if plan.force_two_steps and rows >= 2 * sublane_mult:
            # Cap the tile so the grid has >= 2 steps and both v7x TCs issue DMA.
            half = (rows + 1) // 2
            cap = _cdiv(half, sublane_mult) * sublane_mult
            tile_rows = min(tile_rows, cap)

    grid = (_cdiv(rows, tile_rows),)

    extra = {}
    if donate:
        # Alias input slab onto the output: no second numel-sized HBM buffer.
        extra["input_output_aliases"] = {0: 0}

    return pl.pallas_call(
        _copy_kernel,
        out_shape=jax.ShapeDtypeStruct((rows, cols), slab.dtype),
        grid_spec=pltpu.PrefetchScalarGridSpec(
            num_scalar_prefetch=0,
            grid=grid,
            in_specs=[pl.BlockSpec((tile_rows, cols), lambda i: (i, 0))],
            out_specs=pl.BlockSpec((tile_rows, cols), lambda i: (i, 0)),
        ),
        compiler_params=pltpu.CompilerParams(
            dimension_semantics=("parallel",),
            vmem_limit_bytes=plan.vmem_limit_bytes,
        ),
        cost_estimate=cost,
        **extra,
    )(slab)


def pallas_view(x, size, *, materialize=True, donate=False):
    """Equivalent of View(size).forward(x) = x.contiguous().view(size).

    materialize=False is the true optimum for JAX (arrays are already
    contiguous, so the view is pure metadata).  materialize=True performs the
    explicit `.contiguous()` copy through a Pallas kernel; donate=True further
    aliases input to output so no second HBM buffer is allocated.
    """
    numel = x.size
    out_shape = _resolve_size(numel, size)

    if not materialize or numel == 0:
        # Zero-copy fast path: contiguous view is pure metadata.
        return x.reshape(out_shape)

    itemsize = jnp.dtype(x.dtype).itemsize
    cost = pl.CostEstimate(flops=0, transcendentals=0,
                           bytes_accessed=2 * numel * itemsize)
    plan = _chip_plan()

    cols = _pick_cols(numel)
    if cols is not None:
        # Lane-aligned path: present the flat stream as a (rows, cols) slab.
        slab = x.reshape(numel // cols, cols)
        out_slab = _tiled_copy_slab(slab, plan, itemsize, cost, donate=donate)
        return out_slab.reshape(out_shape)

    # Lane-unaligned fallback.
    if numel * itemsize <= _UNALIGNED_SINGLE_BLOCK_MAX_BYTES:
        # Small tensor: single full-array block (block shape == full dims).
        slab = x.reshape(1, numel)
        out_slab = pl.pallas_call(
            _copy_kernel,
            out_shape=jax.ShapeDtypeStruct((1, numel), x.dtype),
            compiler_params=pltpu.CompilerParams(
                vmem_limit_bytes=plan.vmem_limit_bytes),
            cost_estimate=cost,
        )(slab)
        return out_slab.reshape(out_shape)

    # Large unaligned tensor: pad the flat stream to a lane multiple and reuse
    # the tiled pipeline, then slice the tail back off.  Avoids the previous
    # version's untiled single block that could exceed scoped/physical VMEM.
    # TODO(synk): an in-kernel ragged-tail DMA (pl.ANY + make_async_copy) would
    # remove the extra pad/slice HBM pass for huge lane-unaligned tensors.
    pad = (-numel) % _LANES
    flat = jnp.pad(x.reshape(-1), (0, pad))
    out_slab = _tiled_copy_slab(flat.reshape(-1, _LANES), plan, itemsize, cost)
    return out_slab.reshape(-1)[:numel].reshape(out_shape)


class View:
    """Pallas equivalent of the DisCo `View(nn.Module)`."""

    def __init__(self, size, *, materialize=True, donate=False):
        self.size = tuple(size) if isinstance(size, (tuple, list)) else (size,)
        self.materialize = materialize
        self.donate = donate

    def __call__(self, tensor):
        return pallas_view(tensor, self.size,
                           materialize=self.materialize, donate=self.donate)


if __name__ == "__main__":
    key = jax.random.PRNGKey(0)

    # DisCo encoder usage: flatten NCHW activations to (batch, -1).
    x = jax.random.normal(key, (2, 4, 16, 16), dtype=jnp.float32)
    view = View((-1, 4 * 16 * 16))
    y = jax.block_until_ready(view(x))
    y_ref = x.reshape(2, 4 * 16 * 16)
    assert y.shape == (2, 1024), y.shape
    assert y.dtype == x.dtype
    assert bool(jnp.array_equal(y, y_ref))

    # Lane-unaligned fallback path (numel = 105, not a multiple of 128).
    x2 = jax.random.normal(jax.random.PRNGKey(0), (3, 5, 7), dtype=jnp.float32)
    y2 = jax.block_until_ready(pallas_view(x2, (-1,)))
    assert bool(jnp.array_equal(y2, x2.reshape(-1)))

    # bf16 path exercises dtype-aware sublane sizing and wide-cols selection.
    x3 = jax.random.normal(jax.random.PRNGKey(0), (2, 4, 16, 16),
                           dtype=jnp.bfloat16)
    y3 = jax.block_until_ready(pallas_view(x3, (2, -1)))
    assert bool(jnp.array_equal(y3, x3.reshape(2, -1)))

    # Slightly larger case: wide (rows, 4096) slab; >=2 grid steps on v7x.
    x4 = jax.random.normal(jax.random.PRNGKey(0), (4, 16, 32, 32),
                           dtype=jnp.float32)
    y4 = jax.block_until_ready(pallas_view(x4, (4, -1)))
    assert bool(jnp.array_equal(y4, x4.reshape(4, -1)))

    # Zero-copy metadata path (no kernel, the true optimum for a view).
    y5 = jax.block_until_ready(pallas_view(x, (2, -1), materialize=False))
    assert bool(jnp.array_equal(y5, x.reshape(2, -1)))

    print("KERNEL_OK")
</pallas_src>

<mosaic_0001>
module attributes {stable_mosaic.version = 11 : i64} {
  func.func @_copy_kernel(%arg0: i32, %arg1: memref<1x2048xf32, #tpu.memory_space<vmem>>, %arg2: memref<1x2048xf32, #tpu.memory_space<vmem>>) attributes {dimension_semantics = [#tpu.dimension_semantics<parallel>], iteration_bounds = array<i64: 1>, scalar_prefetch = 0 : i64, scratch_operands = 0 : i64, tpu.core_type = #tpu.core_type<tc>, window_params = [{transform_indices = @transform_0, window_bounds = array<i64: 1, 2048>}, {transform_indices = @transform_1, window_bounds = array<i64: 1, 2048>}]} {
    %c0 = arith.constant 0 : index
    %c0_0 = arith.constant 0 : index
    %0 = vector.load %arg1[%c0, %c0_0] : memref<1x2048xf32, #tpu.memory_space<vmem>>, vector<1x2048xf32>
    %c0_1 = arith.constant 0 : index
    %c0_2 = arith.constant 0 : index
    %1 = vector.load %arg2[%c0_1, %c0_2] : memref<1x2048xf32, #tpu.memory_space<vmem>>, vector<1x2048xf32>
    tpu.vector_store %arg2[%c0_1, %c0_2], %0 {strides = array<i32>} : memref<1x2048xf32, #tpu.memory_space<vmem>>, vector<1x2048xf32>,
    return
  }
  func.func @transform_0(%arg0: i32) -> (i32, i32) {
    %c0_i32 = arith.constant 0 : i32
    %c0_i32_0 = arith.constant 0 : i32
    return %arg0, %c0_i32 : i32, i32
  }
  func.func @transform_1(%arg0: i32) -> (i32, i32) {
    %c0_i32 = arith.constant 0 : i32
    %c0_i32_0 = arith.constant 0 : i32
    return %arg0, %c0_i32 : i32, i32
  }
}

</mosaic_0001>

<bundles_post_ra>
// kernel: tpu_custom_call.1
= control target key start
LH: loop header
LB: loop body
LE: loop exit
PB: predicated region body
PF: predicated region fallthrough
CT: control target
= control target key end

     0   :  { %6 = vsyncpa [#allocation3], 0  ;;  %s116_s0 = inlined_call_operand.hbm [shape: f32[1,2048], index: 0, kind: input, shape index: {}]   ;;  %s117_s1 = inlined_call_operand.hbm [shape: f32[1,2048], index: 1, kind: output, shape index: {}]  }
   0x1   :  { %7 = vsyncpa [#allocation4], 0  ;;  %s13_s8 = sshll.u32 %s116_s0, 4  ;;  %s98_s9 = smov [#allocation2]   ;;  %s14_s8 = int_to_ptr.hbm [resolvable:$true] %s13_s8 }
   0x2   :  { %s15_s10 = sshll.u32 %s98_s9, 4  ;;  %s16_s10 = int_to_ptr.vmem [resolvable:$true] %s15_s10 }
   0x3   :  { %18 = dma.hbm_to_vmem [thread:$0]  %s14_s8, 256, %s16_s10, [#allocation3]  }
   0x4   :  { %94 = dma.done.wait [#allocation3], 256  }
   0x5   :  { %95 = vsyncadd [#allocation3], 4294967040  ;;  %s99_s11 = smov [#allocation5]   ;;  %s34_s15 = sshll.u32 %s117_s1, 4  ;;  %v23_v0 = vld [vmem:[#allocation2] sm:$0xff]  ;;  %v24_v1 = vld [vmem:[#allocation2 + $0x8] sm:$0xff]  ;;  %s35_s15 = int_to_ptr.hbm [resolvable:$true] %s34_s15 }
   0x6   :  { %s32_s12 = sshll.u32 %s99_s11, 4  ;;  %25 = vst [vmem:[#allocation5] sm:$0xff] %v23_v0  ;;  %s33_s12 = int_to_ptr.vmem [resolvable:$true] %s32_s12 }
   0x7   :  { %26 = vst [vmem:[#allocation5 + $0x8] sm:$0xff] %v24_v1 }
   0x8   :  { %37 = dma.vmem_to_hbm [thread:$0]  %s33_s12, 256, %s35_s15, [#allocation4]  }
   0x9   :  { %96 = dma.done.wait [#allocation4], 256  }
   0xa   :  { %97 = vsyncadd [#allocation4], 4294967040 }
   0xb   :  { %42 = vsyncpa [#allocation3], 1 }
   0xc   :  { %43 = vsyncpa [#allocation4], 1 }

</bundles_post_ra>
